<compile_context>
chip_gen: v7x
topology: tpu7x:2x2x1
jax: 0.10.0
libtpu: 0.0.40
codegen_flags: <defaults>
</compile_context>

<pallas_src>
import jax
import jax.numpy as jnp
from jax.experimental import pallas as pl
from jax.experimental.pallas import tpu as pltpu


def _round_up(x, m):
    return (x + m - 1) // m * m


# PyTorch gate order along the 4H dim is [i, f, g, o]; we store [i, f, o, g]
# so the three sigmoid gates are contiguous and the tanh gate is last.
_GATE_PERM = (0, 1, 3, 2)


def prepare_lstm_params(weight_ih, weight_hh, bias_ih, bias_hh, *,
                        matmul_dtype=jnp.bfloat16):
    """One-time parameter prep (hoist out of the per-call path).

    weight_ih: (4H, I), weight_hh: (4H, H), bias_*: (4H,)
    Returns:
      w_combined: (Kp, 4*Hp) stacked+transposed+gate-permuted weight,
                  Kp = round_up(I+H, 128), Hp = round_up(H, 128), dtype=matmul_dtype
      bias_row  : (1, 4*Hp) float32 folded bias (b_ih + b_hh), gate-permuted.
    """
    H4, I = weight_ih.shape
    H = H4 // 4
    Hp = _round_up(H, 128)
    K = I + H
    Kp = _round_up(K, 128)
    perm = jnp.array(_GATE_PERM)

    def regroup(w):  # (4H, cols) -> (4*Hp, cols), gate-reordered + per-gate padded
        cols = w.shape[1]
        w = w.reshape(4, H, cols)[perm]                      # (4, H, cols) order i,f,o,g
        w = jnp.pad(w, ((0, 0), (0, Hp - H), (0, 0)))        # (4, Hp, cols)
        return w.reshape(4 * Hp, cols)

    w_ih_r = regroup(weight_ih)                              # (4Hp, I)
    w_hh_r = regroup(weight_hh)                              # (4Hp, H)
    # Stacked, pre-transposed weight for one fused GEMM:  z(B, Kp) @ W(Kp, 4Hp)
    w = jnp.concatenate([w_ih_r, w_hh_r], axis=1).T          # (I+H, 4Hp)
    w = jnp.pad(w, ((0, Kp - K), (0, 0))).astype(matmul_dtype)

    b = (bias_ih + bias_hh).reshape(4, H)[perm]              # (4, H) order i,f,o,g
    b = jnp.pad(b, ((0, 0), (0, Hp - H))).reshape(1, 4 * Hp).astype(jnp.float32)
    return w, b


def lstm_cell_kernel(z_ref, w_ref, b_ref, cx_ref, hy_ref, cy_ref):
    Hp = hy_ref.shape[-1]
    # One fused MXU matmul, f32 accumulation: gates = [x, hx] @ [Wih^T; Whh^T] + b
    gates = (jnp.dot(z_ref[...], w_ref[...], preferred_element_type=jnp.float32)
             + b_ref[...])                                    # (Bp, 4*Hp)

    # Gate layout is [i | f | o | g]: one sigmoid slab, one tanh slab.
    sig = jax.nn.sigmoid(gates[:, :3 * Hp])                   # (Bp, 3*Hp)
    g = jnp.tanh(gates[:, 3 * Hp:])                           # (Bp, Hp)
    i = sig[:, 0 * Hp:1 * Hp]
    f = sig[:, 1 * Hp:2 * Hp]
    o = sig[:, 2 * Hp:3 * Hp]

    cy = f * cx_ref[...] + i * g
    hy = o * jnp.tanh(cy)

    cy_ref[...] = cy.astype(cy_ref.dtype)
    hy_ref[...] = hy.astype(hy_ref.dtype)


def lstm_cell(x, hx, cx, w_combined, bias_row):
    """Pallas LSTM cell. Matches PyTorch LSTMCell.forward semantics.

    x: (B, I); hx, cx: (B, H)
    w_combined, bias_row: from prepare_lstm_params.
    returns (hy, cy), each (B, H), dtype of x.
    """
    B, I = x.shape
    H = hx.shape[1]
    Kp, N = w_combined.shape
    Hp = N // 4
    Bp = _round_up(B, 8)
    K = I + H

    # Lane/sublane-dense, padded inputs.
    z = jnp.concatenate([x, hx], axis=1)                              # (B, I+H)
    z = jnp.pad(z, ((0, Bp - B), (0, Kp - K))).astype(w_combined.dtype)
    cx_p = jnp.pad(cx.astype(jnp.float32), ((0, Bp - B), (0, Hp - H)))

    hy_p, cy_p = pl.pallas_call(
        lstm_cell_kernel,
        out_shape=(
            jax.ShapeDtypeStruct((Bp, Hp), jnp.float32),
            jax.ShapeDtypeStruct((Bp, Hp), jnp.float32),
        ),
        in_specs=[
            pl.BlockSpec(memory_space=pltpu.MemorySpace.VMEM),  # z = [x, hx]
            pl.BlockSpec(memory_space=pltpu.MemorySpace.VMEM),  # stacked weight
            pl.BlockSpec(memory_space=pltpu.MemorySpace.VMEM),  # folded bias
            pl.BlockSpec(memory_space=pltpu.MemorySpace.VMEM),  # cx
        ],
        out_specs=(
            pl.BlockSpec(memory_space=pltpu.MemorySpace.VMEM),
            pl.BlockSpec(memory_space=pltpu.MemorySpace.VMEM),
        ),
    )(z, w_combined, bias_row, cx_p)

    hy = hy_p[:B, :H].astype(x.dtype)
    cy = cy_p[:B, :H].astype(x.dtype)
    return hy, cy


def _reference(x, hx, cx, weight_ih, weight_hh, bias_ih, bias_hh):
    gates = x @ weight_ih.T + bias_ih + hx @ weight_hh.T + bias_hh
    i, f, g, o = jnp.split(gates, 4, axis=1)
    i = jax.nn.sigmoid(i)
    f = jax.nn.sigmoid(f)
    g = jnp.tanh(g)
    o = jax.nn.sigmoid(o)
    cy = f * cx + i * g
    hy = o * jnp.tanh(cy)
    return hy, cy


if __name__ == "__main__":
    B, I, H = 2, 16, 32

    key = jax.random.PRNGKey(0)
    kx, kh, kc, kwi, kwh, kbi, kbh = jax.random.split(key, 7)

    x  = jax.random.normal(kx, (B, I), dtype=jnp.float32)
    hx = jax.random.normal(kh, (B, H), dtype=jnp.float32)
    cx = jax.random.normal(kc, (B, H), dtype=jnp.float32)

    weight_ih = jax.random.normal(kwi, (4 * H, I), dtype=jnp.float32)
    weight_hh = jax.random.normal(kwh, (4 * H, H), dtype=jnp.float32)
    bias_ih   = jax.random.normal(kbi, (4 * H,), dtype=jnp.float32)
    bias_hh   = jax.random.normal(kbh, (4 * H,), dtype=jnp.float32)

    hy_ref, cy_ref = _reference(x, hx, cx, weight_ih, weight_hh, bias_ih, bias_hh)

    run = jax.jit(lstm_cell)

    # 1) f32 matmul path: exact PyTorch semantics, tight tolerance.
    w32, b32 = prepare_lstm_params(weight_ih, weight_hh, bias_ih, bias_hh,
                                   matmul_dtype=jnp.float32)
    hy32, cy32 = run(x, hx, cx, w32, b32)
    jax.block_until_ready((hy32, cy32))
    assert jnp.allclose(hy32, hy_ref, atol=1e-4, rtol=1e-4), "hy mismatch (f32 path)"
    assert jnp.allclose(cy32, cy_ref, atol=1e-4, rtol=1e-4), "cy mismatch (f32 path)"

    # 2) bf16-operand fast path (f32 accumulation): loose tolerance because the
    #    MXU operands are rounded to bf16 while the reference stays in f32.
    w16, b16 = prepare_lstm_params(weight_ih, weight_hh, bias_ih, bias_hh,
                                   matmul_dtype=jnp.bfloat16)
    hy16, cy16 = run(x, hx, cx, w16, b16)
    jax.block_until_ready((hy16, cy16))
    assert jnp.allclose(hy16, hy_ref, atol=1.5e-1, rtol=1e-1), "hy mismatch (bf16 path)"
    assert jnp.allclose(cy16, cy_ref, atol=1.5e-1, rtol=1e-1), "cy mismatch (bf16 path)"

    print("KERNEL_OK")
</pallas_src>

<mosaic_0001>
module attributes {stable_mosaic.version = 11 : i64} {
  func.func @lstm_cell_kernel(%arg0: memref<8x128xf32, #tpu.memory_space<vmem>>, %arg1: memref<128x512xf32, #tpu.memory_space<vmem>>, %arg2: memref<1x512xf32, #tpu.memory_space<vmem>>, %arg3: memref<8x128xf32, #tpu.memory_space<vmem>>, %arg4: memref<8x128xf32, #tpu.memory_space<vmem>>, %arg5: memref<8x128xf32, #tpu.memory_space<vmem>>) attributes {dimension_semantics = [], scalar_prefetch = 0 : i64, scratch_operands = 0 : i64, tpu.core_type = #tpu.core_type<tc>} {
    %c0 = arith.constant 0 : index
    %c0_0 = arith.constant 0 : index
    %0 = vector.load %arg0[%c0, %c0_0] : memref<8x128xf32, #tpu.memory_space<vmem>>, vector<8x128xf32>
    %c0_1 = arith.constant 0 : index
    %c0_2 = arith.constant 0 : index
    %1 = vector.load %arg1[%c0_1, %c0_2] : memref<128x512xf32, #tpu.memory_space<vmem>>, vector<128x512xf32>
    %cst = arith.constant dense<0.000000e+00> : vector<8x512xf32>
    %2 = tpu.matmul %0, %1, %cst {dimension_numbers = #tpu.dot_dimension_numbers<[1], [0], [0], [1], [0, 0, 1, 1], [], []>} : vector<8x128xf32>, vector<128x512xf32>, vector<8x512xf32> -> vector<8x512xf32>
    %c0_3 = arith.constant 0 : index
    %c0_4 = arith.constant 0 : index
    %3 = vector.load %arg2[%c0_3, %c0_4] : memref<1x512xf32, #tpu.memory_space<vmem>>, vector<1x512xf32>
    %4 = vector.broadcast %3 : vector<1x512xf32> to vector<8x512xf32>
    %5 = arith.addf %2, %4 : vector<8x512xf32>
    %6 = vector.extract_strided_slice %5 {offsets = [0, 0], sizes = [8, 384], strides = [1, 1]} : vector<8x512xf32> to vector<8x384xf32>
    %7 = arith.negf %6 : vector<8x384xf32>
    %8 = math.exp %7 : vector<8x384xf32>
    %cst_5 = arith.constant 1.000000e+00 : f32
    %9 = vector.broadcast %cst_5 : f32 to vector<8x384xf32>
    %10 = arith.addf %9, %8 : vector<8x384xf32>
    %11 = arith.divf %9, %10 : vector<8x384xf32>
    %12 = vector.extract_strided_slice %5 {offsets = [0, 384], sizes = [8, 128], strides = [1, 1]} : vector<8x512xf32> to vector<8x128xf32>
    %13 = math.tanh %12 : vector<8x128xf32>
    %14 = vector.extract_strided_slice %11 {offsets = [0, 0], sizes = [8, 128], strides = [1, 1]} : vector<8x384xf32> to vector<8x128xf32>
    %15 = vector.extract_strided_slice %11 {offsets = [0, 128], sizes = [8, 128], strides = [1, 1]} : vector<8x384xf32> to vector<8x128xf32>
    %16 = vector.extract_strided_slice %11 {offsets = [0, 256], sizes = [8, 128], strides = [1, 1]} : vector<8x384xf32> to vector<8x128xf32>
    %c0_6 = arith.constant 0 : index
    %c0_7 = arith.constant 0 : index
    %17 = vector.load %arg3[%c0_6, %c0_7] : memref<8x128xf32, #tpu.memory_space<vmem>>, vector<8x128xf32>
    %18 = arith.mulf %15, %17 : vector<8x128xf32>
    %19 = arith.mulf %14, %13 : vector<8x128xf32>
    %20 = arith.addf %18, %19 : vector<8x128xf32>
    %21 = math.tanh %20 : vector<8x128xf32>
    %22 = arith.mulf %16, %21 : vector<8x128xf32>
    %c0_8 = arith.constant 0 : index
    %c0_9 = arith.constant 0 : index
    %23 = vector.load %arg5[%c0_8, %c0_9] : memref<8x128xf32, #tpu.memory_space<vmem>>, vector<8x128xf32>
    tpu.vector_store %arg5[%c0_8, %c0_9], %20 {strides = array<i32>} : memref<8x128xf32, #tpu.memory_space<vmem>>, vector<8x128xf32>,
    %c0_10 = arith.constant 0 : index
    %c0_11 = arith.constant 0 : index
    %24 = vector.load %arg4[%c0_10, %c0_11] : memref<8x128xf32, #tpu.memory_space<vmem>>, vector<8x128xf32>
    tpu.vector_store %arg4[%c0_10, %c0_11], %22 {strides = array<i32>} : memref<8x128xf32, #tpu.memory_space<vmem>>, vector<8x128xf32>,
    return
  }
}

</mosaic_0001>

<bundles_post_ra>
// kernel: lstm_cell.1
= control target key start
LH: loop header
LB: loop body
LE: loop exit
PB: predicated region body
PF: predicated region fallthrough
CT: control target
= control target key end

     0   :  { %11 = vsyncpa [#allocation3], 0  ;;  %s409_s18 = smov [#allocation2]   ;;  %s470_s0 = inlined_call_operand.vmem [shape: f32[8,128], index: 0, kind: input, shape index: {}]   ;;  %s471_s1 = inlined_call_operand.hbm [shape: f32[128,512], index: 1, kind: input, shape index: {}]   ;;  %s472_s2 = inlined_call_operand.vmem [shape: f32[1,512], index: 2, kind: input, shape index: {}]   ;;  %s473_s3 = inlined_call_operand.vmem [shape: f32[8,128], index: 3, kind: input, shape index: {}]   ;;  %s474_s4 = inlined_call_operand.vmem [shape: f32[8,128], index: 4, kind: output, shape index: {0}]   ;;  %s475_s5 = inlined_call_operand.vmem [shape: f32[8,128], index: 5, kind: output, shape index: {1}]  }
   0x1   :  { %s19_s19 = sshll.u32 %s409_s18, 4  ;;  %s385_s22 = scalar_lea.hbm %s471_s1, 8192  ;;  %s20_s19 = int_to_ptr.vmem [resolvable:$true] %s19_s19 }
   0x2   :  { %p386_p0 = scmp.ne.s32.totalorder %s471_s1, %s385_s22  ;;  %p389_p1 = scmp.lt.u32.totalorder %s385_s22, %s471_s1 }
   0x4   :  { %p391_p2 = pnand %p389_p1, %p386_p0 }
   0x6   :  { %394 = shalt.err (!%p391_p2)
}
   0x7   :  { %s395_s27 = scalar_lea.vmem %s20_s19, 8192  ;;  %p400_p4 = scmp.lt.s32.totalorder %s20_s19, %s20_s19 }
   0x8   :  { %p396_p3 = scmp.ne.s32.totalorder %s20_s19, %s395_s27  ;;  %p401_p5 = scmp.lt.s32.totalorder %s395_s27, %s395_s27 }
   0xa   :  { %p402_p6 = por %p401_p5, %p400_p4 }
   0xc   :  { %p403_p7 = pnand %p402_p6, %p396_p3 }
   0xe   :  { %406 = shalt.err (!%p403_p7)
}
   0xf   :  { %s410_s28 = smov 512   ;;  %s411_s29 = smov 32  }
  0x10   :  { %25 = dma.hbm_to_vmem [thread:$0]  %s471_s1, 8192, %s20_s19, [#allocation3], %s410_s28, %s410_s28, %s411_s29  }
  0x11   :  { %407 = dma.done.wait [#allocation3], 8192  }
  0x12   :  { %408 = vsyncadd [#allocation3], 4294959104  ;;  %v412_v0 = vmov 0.0   ;;  %v35_v1 = vld [vmem:[#allocation2 + $0x8] sm:$0xff]  ;;  %v34_v3 = vld [vmem:[#allocation2] sm:$0xff] }
  0x13   :  { %184 = vmatprep.mubr.f32.mxu0 %v412_v0  ;;  %255 = vmatprep.mubr.f32.mxu1 %v412_v0  ;;  %v39_v2 = vld [vmem:[#allocation2 + $0x28] sm:$0xff]  ;;  %v38_v5 = vld [vmem:[#allocation2 + $0x20] sm:$0xff]  ;;  %v37_v19 = vld [vmem:[#allocation2 + $0x18] sm:$0xff] }
  0x14   :  { %v301_v4 = vpack.c.bf16 %v39_v2, %v35_v1  ;;  %v43_v6 = vld [vmem:[#allocation2 + $0x48] sm:$0xff]  ;;  %v303_v8 = vpack.c.bf16 %v38_v5, %v34_v3  ;;  %v42_v10 = vld [vmem:[#allocation2 + $0x40] sm:$0xff]  ;;  %v41_v20 = vld [vmem:[#allocation2 + $0x38] sm:$0xff] }
  0x15   :  { %v47_v7 = vld [vmem:[#allocation2 + $0x68] sm:$0xff]  ;;  %v46_v11 = vld [vmem:[#allocation2 + $0x60] sm:$0xff]  ;;  %v333_v22 = vpack.c.bf16 %v41_v20, %v37_v19  ;;  %v36_v23 = vld [vmem:[#allocation2 + $0x10] sm:$0xff] }
  0x16   :  { %v305_v9 = vpack.c.bf16 %v47_v7, %v43_v6  ;;  %v51_v12 = vld [vmem:[#allocation2 + $0x88] sm:$0xff]  ;;  %302 = vmatprep.subr.bf16.mxu0 %v301_v4  ;;  %v307_v14 = vpack.c.bf16 %v46_v11, %v42_v10  ;;  %v50_v15 = vld [vmem:[#allocation2 + $0x80] sm:$0xff]  ;;  %v40_v24 = vld [vmem:[#allocation2 + $0x30] sm:$0xff] }
  0x17   :  { %v55_v13 = vld [vmem:[#allocation2 + $0xa8] sm:$0xff]  ;;  %304 = vmatpush1.bf16.msra.mxu0 %v303_v8  ;;  %v54_v16 = vld [vmem:[#allocation2 + $0xa0] sm:$0xff]  ;;  %v335_v25 = vpack.c.bf16 %v40_v24, %v36_v23  ;;  %334 = vmatprep.subr.bf16.mxu1 %v333_v22  ;;  %v45_v27 = vld [vmem:[#allocation2 + $0x58] sm:$0xff] }
  0x18   :  { %306 = vmatprep.subr.bf16.mxu0 %v305_v9  ;;  %v309_v17 = vpack.c.bf16 %v55_v13, %v51_v12  ;;  %v59_v18 = vld [vmem:[#allocation2 + $0xc8] sm:$0xff]  ;;  %v311_v26 = vpack.c.bf16 %v54_v16, %v50_v15  ;;  %v49_v28 = vld [vmem:[#allocation2 + $0x78] sm:$0xff]  ;;  %v44_v29 = vld [vmem:[#allocation2 + $0x50] sm:$0xff] }
  0x19   :  { %v63_v21 = vld [vmem:[#allocation2 + $0xe8] sm:$0xff]  ;;  %v58_v31 = vld [vmem:[#allocation2 + $0xc0] sm:$0xff]  ;;  %336 = vmatpush1.bf16.msra.mxu1 %v335_v25  ;;  %v337_v33 = vpack.c.bf16 %v49_v28, %v45_v27  ;;  %v48_v34 = vld [vmem:[#allocation2 + $0x70] sm:$0xff] }
  0x1a   :  { %v313_v30 = vpack.c.bf16 %v63_v21, %v59_v18  ;;  %v62_v32 = vld [vmem:[#allocation2 + $0xe0] sm:$0xff]  ;;  %v67_v35 = vld [vmem:[#allocation2 + $0x108] sm:$0xff]  ;;  %v339_v37 = vpack.c.bf16 %v48_v34, %v44_v29  ;;  %v53_v38 = vld [vmem:[#allocation2 + $0x98] sm:$0xff]  ;;  %v100_v34 = vlaneseq }
  0x1b   :  { %308 = vmatpush1.bf16.msra.mxu0 %v307_v14  ;;  %v71_v36 = vld [vmem:[#allocation2 + $0x128] sm:$0xff]  ;;  %338 = vmatprep.subr.bf16.mxu1 %v337_v33  ;;  %v57_v39 = vld [vmem:[#allocation2 + $0xb8] sm:$0xff]  ;;  %v52_v40 = vld [vmem:[#allocation2 + $0x90] sm:$0xff]  ;;  %v315_v42 = vpack.c.bf16 %v62_v32, %v58_v31 }
  0x1c   :  { %310 = vmatprep.subr.bf16.mxu0 %v309_v17  ;;  %v56_v41 = vld [vmem:[#allocation2 + $0xb0] sm:$0xff]  ;;  %v66_v43 = vld [vmem:[#allocation2 + $0x100] sm:$0xff]  ;;  %v341_v45 = vpack.c.bf16 %v57_v39, %v53_v38  ;;  %v317_v46 = vpack.c.bf16 %v71_v36, %v67_v35  ;;  %v75_v47 = vld [vmem:[#allocation2 + $0x148] sm:$0xff]  ;;  %v101_v35 = vshrl.u32 %v100_v34, 7 }
  0x1d   :  { %v70_v44 = vld [vmem:[#allocation2 + $0x120] sm:$0xff]  ;;  %340 = vmatpush1.bf16.msra.mxu1 %v339_v37  ;;  %v343_v48 = vpack.c.bf16 %v56_v41, %v52_v40  ;;  %v61_v49 = vld [vmem:[#allocation2 + $0xd8] sm:$0xff]  ;;  %v79_v51 = vld [vmem:[#allocation2 + $0x168] sm:$0xff] }
  0x1e   :  { %v65_v50 = vld [vmem:[#allocation2 + $0xf8] sm:$0xff]  ;;  %342 = vmatprep.subr.bf16.mxu1 %v341_v45  ;;  %v60_v53 = vld [vmem:[#allocation2 + $0xd0] sm:$0xff]  ;;  %v319_v55 = vpack.c.bf16 %v70_v44, %v66_v43  ;;  %v321_v58 = vpack.c.bf16 %v79_v51, %v75_v47  ;;  %v74_v59 = vld [vmem:[#allocation2 + $0x140] sm:$0xff]  ;;  %v102_v36 = vsub.s32 0, %v101_v35  ;;  %v106_v38 = vsub.s32 1, %v101_v35 }
  0x1f   :  { %312 = vmatpush1.bf16.msra.mxu0 %v311_v26  ;;  %v345_v52 = vpack.c.bf16 %v65_v50, %v61_v49  ;;  %v64_v54 = vld [vmem:[#allocation2 + $0xf0] sm:$0xff]  ;;  %v69_v56 = vld [vmem:[#allocation2 + $0x118] sm:$0xff]  ;;  %v78_v60 = vld [vmem:[#allocation2 + $0x160] sm:$0xff]  ;;  %v110_v41 = vsub.s32 2, %v101_v35  ;;  %v114_v49 = vsub.s32 3, %v101_v35 }
  0x20   :  { %314 = vmatprep.subr.bf16.mxu0 %v313_v30  ;;  %v73_v57 = vld [vmem:[#allocation2 + $0x138] sm:$0xff]  ;;  %v83_v61 = vld [vmem:[#allocation2 + $0x188] sm:$0xff]  ;;  %v347_v62 = vpack.c.bf16 %v64_v54, %v60_v53  ;;  %v68_v1 = vld [vmem:[#allocation2 + $0x110] sm:$0xff]  ;;  %v323_v5 = vpack.c.bf16 %v78_v60, %v74_v59 }
  0x21   :  { %344 = vmatpush1.bf16.msra.mxu1 %v343_v48  ;;  %v87_v63 = vld [vmem:[#allocation2 + $0x1a8] sm:$0xff]  ;;  %v349_v0 = vpack.c.bf16 %v73_v57, %v69_v56  ;;  %v72_v2 = vld [vmem:[#allocation2 + $0x130] sm:$0xff]  ;;  %v77_v3 = vld [vmem:[#allocation2 + $0x158] sm:$0xff] }
  0x22   :  { %346 = vmatprep.subr.bf16.mxu1 %v345_v52  ;;  %v81_v4 = vld [vmem:[#allocation2 + $0x178] sm:$0xff]  ;;  %v325_v6 = vpack.c.bf16 %v87_v63, %v83_v61  ;;  %v82_v7 = vld [vmem:[#allocation2 + $0x180] sm:$0xff]  ;;  %v91_v9 = vld [vmem:[#allocation2 + $0x1c8] sm:$0xff]  ;;  %v351_v10 = vpack.c.bf16 %v72_v2, %v68_v1 }
  0x23   :  { %316 = vmatpush1.bf16.msra.mxu0 %v315_v42  ;;  %v86_v8 = vld [vmem:[#allocation2 + $0x1a0] sm:$0xff]  ;;  %v95_v11 = vld [vmem:[#allocation2 + $0x1e8] sm:$0xff]  ;;  %v353_v12 = vpack.c.bf16 %v81_v4, %v77_v3  ;;  %v76_v13 = vld [vmem:[#allocation2 + $0x150] sm:$0xff] }
  0x24   :  { %318 = vmatprep.subr.bf16.mxu0 %v317_v46  ;;  %v80_v14 = vld [vmem:[#allocation2 + $0x170] sm:$0xff]  ;;  %v85_v15 = vld [vmem:[#allocation2 + $0x198] sm:$0xff]  ;;  %v327_v17 = vpack.c.bf16 %v86_v8, %v82_v7  ;;  %v329_v18 = vpack.c.bf16 %v95_v11, %v91_v9  ;;  %v90_v19 = vld [vmem:[#allocation2 + $0x1c0] sm:$0xff] }
  0x25   :  { %348 = vmatpush1.bf16.msra.mxu1 %v347_v62  ;;  %v89_v16 = vld [vmem:[#allocation2 + $0x1b8] sm:$0xff]  ;;  %v94_v20 = vld [vmem:[#allocation2 + $0x1e0] sm:$0xff]  ;;  %v355_v21 = vpack.c.bf16 %v80_v14, %v76_v13  ;;  %v84_v23 = vld [vmem:[#allocation2 + $0x190] sm:$0xff] }
  0x26   :  { %350 = vmatprep.subr.bf16.mxu1 %v349_v0  ;;  %v357_v22 = vpack.c.bf16 %v89_v16, %v85_v15  ;;  %v88_v24 = vld [vmem:[#allocation2 + $0x1b0] sm:$0xff]  ;;  %v93_v25 = vld [vmem:[#allocation2 + $0x1d8] sm:$0xff]  ;;  %v331_v27 = vpack.c.bf16 %v94_v20, %v90_v19  ;;  %v33_v32 = vld [vmem:[%s470_s0] sm:$0xff] }
  0x27   :  { %320 = vmatpush1.bf16.msra.mxu0 %v319_v55  ;;  %v97_v26 = vld [vmem:[#allocation2 + $0x1f8] sm:$0xff]  ;;  %v359_v28 = vpack.c.bf16 %v88_v24, %v84_v23  ;;  %v92_v30 = vld [vmem:[#allocation2 + $0x1d0] sm:$0xff]  ;;  %v98_v37 = vld [vmem:[%s472_s2] sm:$0xf] }
  0x28   :  { %322 = vmatprep.subr.bf16.mxu0 %v321_v58  ;;  %v361_v29 = vpack.c.bf16 %v97_v26, %v93_v25  ;;  %v96_v31 = vld [vmem:[#allocation2 + $0x1f0] sm:$0xff]  ;;  %v103_v39 = vrot.slane %v98_v37, %v102_v36  ;;  %v107_v40 = vrot.slane %v98_v37, %v106_v38  ;;  %v111_v47 = vrot.slane %v98_v37, %v110_v41  ;;  %v281_v62 = vld [vmem:[%s473_s3] sm:$0xff] }
  0x29   :  { %352 = vmatpush1.bf16.msra.mxu1 %v351_v10  ;;  %v363_v33 = vpack.c.bf16 %v96_v31, %v92_v30  ;;  %v115_v53 = vrot.slane %v98_v37, %v114_v49 }
  0x2a   :  { %354 = vmatprep.subr.bf16.mxu1 %v353_v12 }
  0x2b   :  { %324 = vmatpush1.bf16.msra.mxu0 %v323_v5 }
  0x2c   :  { %326 = vmatprep.subr.bf16.mxu0 %v325_v6 }
  0x2d   :  { %356 = vmatpush1.bf16.msra.mxu1 %v355_v21 }
  0x2e   :  { %358 = vmatprep.subr.bf16.mxu1 %v357_v22 }
  0x2f   :  { %328 = vmatpush1.bf16.msra.mxu0 %v327_v17 }
  0x30   :  { %330 = vmatprep.subr.bf16.mxu0 %v329_v18 }
  0x31   :  { %360 = vmatpush1.bf16.msra.mxu1 %v359_v28 }
  0x32   :  { %362 = vmatprep.subr.bf16.mxu1 %v361_v29 }
  0x33   :  { %332 = vmatpush1.bf16.msra.mxu0 %v331_v27 }
  0x35   :  { %364 = vmatpush1.bf16.msra.mxu1 %v363_v33 }
  0x36   :  { %185 = vmatmul.mubr.f32.vlgmr.msra.gmra.mrb[0].mxu0 %v33_v32 }
  0x38   :  { %256 = vmatmul.mubr.f32.vlgmr.msra.gmra.mrb[0].mxu1 %v33_v32 }
 0x109   :  { %v186_v42 = vpop.f32.mrb[0].mxu0 }
 0x10a   :  { %v187_v43 = vadd.f32 %v186_v42, %v103_v39  ;;  %v188_v44 = vpop.f32.mrb[1].mxu0 }
 0x10b   :  { %v189_v45 = vadd.f32 %v188_v44, %v107_v40  ;;  %v257_v50 = vpop.f32.mrb[0].mxu1 }
 0x10c   :  { %v298_v46 = vmul.f32 -1.442695, %v187_v43  ;;  %v259_v51 = vpop.f32.mrb[1].mxu1  ;;  %v258_v52 = vadd.f32 %v257_v50, %v111_v47 }
 0x10d   :  { %v299_v48 = vmul.f32 -1.442695, %v189_v45  ;;  %v260_v55 = vadd.f32 %v259_v51, %v115_v53 }
 0x10e   :  { %369 = vpow2.f32 %v298_v46  ;;  %v300_v54 = vmul.f32 -1.442695, %v258_v52 }
 0x10f   :  { %371 = vpow2.f32 %v299_v48 }
 0x110   :  { %373 = vpow2.f32 %v300_v54 }
 0x111   :  { %375 = vtanh.f32 %v260_v55 }
 0x118   :  { %v370_v56 = vpop.eup %369 }
 0x119   :  { %v372_v57 = vpop.eup %371  ;;  %v271_v58 = vadd.f32 1.0, %v370_v56 }
 0x11a   :  { %v272_v59 = vadd.f32 1.0, %v372_v57  ;;  %v374_v60 = vpop.eup %373 }
 0x11b   :  { %377 = vrcp.f32 %v271_v58  ;;  %v376_v61 = vpop.eup %375  ;;  %v273_v0 = vadd.f32 1.0, %v374_v60 }
 0x11c   :  { %379 = vrcp.f32 %v272_v59 }
 0x11d   :  { %381 = vrcp.f32 %v273_v0 }
 0x125   :  { %v378_v63 = vpop.eup %377 }
 0x126   :  { %v380_v1 = vpop.eup %379  ;;  %v283_v2 = vmul.f32 %v378_v63, %v376_v61 }
 0x127   :  { %v282_v3 = vmul.f32 %v380_v1, %v281_v62  ;;  %v382_v5 = vpop.eup %381 }
 0x129   :  { %v284_v4 = vadd.f32 %v283_v2, %v282_v3 }
 0x12b   :  { %383 = vtanh.f32 %v284_v4  ;;  %287 = vst [vmem:[%s475_s5] sm:$0xff] %v284_v4 }
 0x135   :  { %v384_v6 = vpop.eup %383 }
 0x136   :  { %v286_v7 = vmul.f32 %v384_v6, %v382_v5 }
 0x138   :  { %288 = vst [vmem:[%s474_s4] sm:$0xff] %v286_v7 }
 0x139   :  { %297 = vsyncpa [#allocation3], 1 }

</bundles_post_ra>
